<compile_context>
chip_gen: v7x
topology: tpu7x:2x2x1
jax: 0.10.0
libtpu: 0.0.40
codegen_flags: <defaults>
</compile_context>

<pallas_src>
import jax
import jax.numpy as jnp
from jax import lax
from jax.experimental import pallas as pl
from jax.experimental.pallas import tpu as pltpu


def _round_up(x, m):
    return ((x + m - 1) // m) * m


def _se_kernel(x_ref, w1_ref, w2_ref, o_ref):
    # x_ref: (TILE_B, C_pad); w1_ref: (H, C_pad)  [PyTorch layout, C-padded]
    # w2_ref: (C_pad, H);     o_ref: (TILE_B, C_pad)
    x = x_ref[...]

    # Squeeze: AdaptiveAvgPool1d(1) over a size-1 trailing dim is the identity.
    # Excitation MLP; contract directly against PyTorch-layout weights.
    h = lax.dot_general(
        x, w1_ref[...],
        dimension_numbers=(((1,), (1,)), ((), ())),
        preferred_element_type=jnp.float32,
    )                                               # (TILE_B, H), f32 accum
    h = jnp.maximum(h, 0.0)                         # ReLU
    y = lax.dot_general(
        h.astype(w2_ref.dtype), w2_ref[...],
        dimension_numbers=(((1,), (1,)), ((), ())),
        preferred_element_type=jnp.float32,
    )                                               # (TILE_B, C_pad), f32 accum
    y = jax.nn.sigmoid(y)                           # gate in f32 (EUP)

    # Channel re-weighting; gate math in f32, store in the output dtype.
    o_ref[...] = (x.astype(jnp.float32) * y).astype(o_ref.dtype)


def se_layer(x, w1, w2):
    """x: (B, C); w1: (H, C) = fc[0].weight; w2: (C, H) = fc[2].weight (PyTorch layouts)."""
    B, C = x.shape
    H = w1.shape[0]
    itemsize = jnp.dtype(x.dtype).itemsize
    w_itemsize = jnp.dtype(w1.dtype).itemsize

    # Lane-dense channel dim (multiple of 128).
    C_pad = _round_up(C, 128)

    # Batch tile: as big as comfortably fits scoped VMEM (~4 MiB per tile buffer),
    # capped at 1024 rows, floor 8 (sublane multiple), never larger than the batch.
    tile_b = max(8, min(1024, ((4 << 20) // (C_pad * itemsize)) // 8 * 8))
    tile_b = min(tile_b, _round_up(B, 8))
    B_pad = _round_up(B, tile_b)
    grid = (pl.cdiv(B_pad, tile_b),)

    # Zero-pad (zero pad-channels keep the math exact: padded w1 columns / w2 rows
    # are zero, and padded output channels are x_pad * sigmoid(0) = 0, sliced off).
    x_p = x
    if B_pad != B or C_pad != C:
        x_p = jnp.pad(x, ((0, B_pad - B), (0, C_pad - C)))
    w1_p = jnp.pad(w1, ((0, 0), (0, C_pad - C))) if C_pad != C else w1
    w2_p = jnp.pad(w2, ((0, C_pad - C), (0, 0))) if C_pad != C else w2

    # VMEM budget: 2x double-buffered (in + out) tiles + resident weights + slack.
    vmem_need = (4 * tile_b * C_pad) * itemsize + (2 * H * C_pad) * w_itemsize + (2 << 20)
    vmem_limit = int(min(max(vmem_need, 32 << 20), 64 << 20))

    cost = pl.CostEstimate(
        flops=4 * B * C * H,                 # two (B,C)x(C,H)-sized matmuls
        transcendentals=B * C,               # sigmoid
        bytes_accessed=2 * B * C * itemsize + 2 * H * C * w_itemsize,
    )

    out_p = pl.pallas_call(
        _se_kernel,
        out_shape=jax.ShapeDtypeStruct((B_pad, C_pad), x.dtype),
        grid=grid,
        in_specs=[
            pl.BlockSpec((tile_b, C_pad), lambda i: (i, 0)),   # streamed, pipelined
            pl.BlockSpec((H, C_pad), lambda i: (0, 0)),        # VMEM-resident weight
            pl.BlockSpec((C_pad, H), lambda i: (0, 0)),        # VMEM-resident weight
        ],
        out_specs=pl.BlockSpec((tile_b, C_pad), lambda i: (i, 0)),
        compiler_params=pltpu.CompilerParams(
            dimension_semantics=("parallel",),                 # shard batch across TCs (v7x)
            vmem_limit_bytes=vmem_limit,
        ),
        cost_estimate=cost,
    )(x_p, w1_p, w2_p)

    return out_p[:B, :C]


def se_layer_ref(x, w1, w2):
    y = jnp.maximum(x @ w1.T, 0.0)
    y = jax.nn.sigmoid(y @ w2.T)
    return x * y


if __name__ == "__main__":
    # Small shapes consistent with the module: channel divisible by reduction=16.
    B, C, reduction = 8, 64, 16
    H = C // reduction  # 4

    key = jax.random.PRNGKey(0)
    kx, k1, k2 = jax.random.split(key, 3)

    x = jax.random.normal(kx, (B, C), dtype=jnp.float32)
    # Deterministic "Kaiming-uniform"-like init (synthetic, not a checkpoint load).
    w1 = jax.random.uniform(k1, (H, C), dtype=jnp.float32,
                            minval=-1.0 / jnp.sqrt(C), maxval=1.0 / jnp.sqrt(C))
    w2 = jax.random.uniform(k2, (C, H), dtype=jnp.float32,
                            minval=-1.0 / jnp.sqrt(H), maxval=1.0 / jnp.sqrt(H))

    out = se_layer(x, w1, w2)
    out = jax.block_until_ready(out)

    ref = se_layer_ref(x, w1, w2)
    assert out.shape == ref.shape, "shape mismatch vs reference"
    assert jnp.allclose(out, ref, atol=1e-5, rtol=1e-5), "mismatch vs reference"

    print("KERNEL_OK")
</pallas_src>

<mosaic_0001>
module attributes {stable_mosaic.version = 11 : i64} {
  func.func @_se_kernel(%arg0: i32, %arg1: memref<8x128xf32, #tpu.memory_space<vmem>>, %arg2: memref<4x128xf32, #tpu.memory_space<vmem>>, %arg3: memref<128x4xf32, #tpu.memory_space<vmem>>, %arg4: memref<8x128xf32, #tpu.memory_space<vmem>>) attributes {dimension_semantics = [#tpu.dimension_semantics<parallel>], iteration_bounds = array<i64: 1>, scalar_prefetch = 0 : i64, scratch_operands = 0 : i64, tpu.core_type = #tpu.core_type<tc>, window_params = [{transform_indices = @transform_0, window_bounds = array<i64: 8, 128>}, {pipeline_mode = #tpu.pipeline_mode<synchronous>, transform_indices = @transform_1, window_bounds = array<i64: 4, 128>}, {pipeline_mode = #tpu.pipeline_mode<synchronous>, transform_indices = @transform_2, window_bounds = array<i64: 128, 4>}, {transform_indices = @transform_3, window_bounds = array<i64: 8, 128>}]} {
    %c0 = arith.constant 0 : index
    %c0_0 = arith.constant 0 : index
    %0 = vector.load %arg1[%c0, %c0_0] : memref<8x128xf32, #tpu.memory_space<vmem>>, vector<8x128xf32>
    %c0_1 = arith.constant 0 : index
    %c0_2 = arith.constant 0 : index
    %1 = vector.load %arg2[%c0_1, %c0_2] : memref<4x128xf32, #tpu.memory_space<vmem>>, vector<4x128xf32>
    %cst = arith.constant dense<0.000000e+00> : vector<8x4xf32>
    %2 = tpu.matmul %0, %1, %cst {dimension_numbers = #tpu.dot_dimension_numbers<[1], [1], [0], [0], [0, 0, 1, 0], [], []>} : vector<8x128xf32>, vector<4x128xf32>, vector<8x4xf32> -> vector<8x4xf32>
    %cst_3 = arith.constant 0.000000e+00 : f32
    %3 = vector.broadcast %cst_3 : f32 to vector<8x4xf32>
    %4 = arith.maximumf %2, %3 : vector<8x4xf32>
    %c0_4 = arith.constant 0 : index
    %c0_5 = arith.constant 0 : index
    %5 = vector.load %arg3[%c0_4, %c0_5] : memref<128x4xf32, #tpu.memory_space<vmem>>, vector<128x4xf32>
    %cst_6 = arith.constant dense<0.000000e+00> : vector<8x128xf32>
    %6 = tpu.matmul %4, %5, %cst_6 {dimension_numbers = #tpu.dot_dimension_numbers<[1], [1], [0], [0], [0, 0, 1, 0], [], []>} : vector<8x4xf32>, vector<128x4xf32>, vector<8x128xf32> -> vector<8x128xf32>
    %7 = arith.negf %6 : vector<8x128xf32>
    %8 = math.exp %7 : vector<8x128xf32>
    %cst_7 = arith.constant 1.000000e+00 : f32
    %9 = vector.broadcast %cst_7 : f32 to vector<8x128xf32>
    %10 = arith.addf %9, %8 : vector<8x128xf32>
    %11 = arith.divf %9, %10 : vector<8x128xf32>
    %12 = arith.mulf %0, %11 : vector<8x128xf32>
    %c0_8 = arith.constant 0 : index
    %c0_9 = arith.constant 0 : index
    %13 = vector.load %arg4[%c0_8, %c0_9] : memref<8x128xf32, #tpu.memory_space<vmem>>, vector<8x128xf32>
    tpu.vector_store %arg4[%c0_8, %c0_9], %12 {strides = array<i32>} : memref<8x128xf32, #tpu.memory_space<vmem>>, vector<8x128xf32>,
    return
  }
  func.func @transform_0(%arg0: i32) -> (i32, i32) {
    %c0_i32 = arith.constant 0 : i32
    %c0_i32_0 = arith.constant 0 : i32
    return %arg0, %c0_i32 : i32, i32
  }
  func.func @transform_1(%arg0: i32) -> (i32, i32) {
    %c0_i32 = arith.constant 0 : i32
    %c0_i32_0 = arith.constant 0 : i32
    %c0_i32_1 = arith.constant 0 : i32
    return %c0_i32, %c0_i32_0 : i32, i32
  }
  func.func @transform_2(%arg0: i32) -> (i32, i32) {
    %c0_i32 = arith.constant 0 : i32
    %c0_i32_0 = arith.constant 0 : i32
    %c0_i32_1 = arith.constant 0 : i32
    return %c0_i32, %c0_i32_0 : i32, i32
  }
  func.func @transform_3(%arg0: i32) -> (i32, i32) {
    %c0_i32 = arith.constant 0 : i32
    %c0_i32_0 = arith.constant 0 : i32
    return %arg0, %c0_i32 : i32, i32
  }
}

</mosaic_0001>

<bundles_post_ra>
// kernel: tpu_custom_call.1
= control target key start
LH: loop header
LB: loop body
LE: loop exit
PB: predicated region body
PF: predicated region fallthrough
CT: control target
= control target key end

     0   :  { %v389_v1 = vmov 0.0   ;;  %vm390_vm0 = vmmov 0   ;;  %vm104_vm1 = vcmask 31744   ;;  %v391_v5 = vmov 0.0|0.0   ;;  %s502_s0 = inlined_call_operand.vmem [shape: f32[8,128], index: 0, kind: input, shape index: {}]   ;;  %s503_s1 = inlined_call_operand.vmem [shape: f32[4,128], index: 1, kind: input, shape index: {}]   ;;  %s504_s2 = inlined_call_operand.vmem [shape: f32[128,4], index: 2, kind: input, shape index: {}]   ;;  %s505_s3 = inlined_call_operand.hbm [shape: f32[8,128], index: 3, kind: output, shape index: {}]  }
   0x1   :  { %v16_v0 = vld [vmem:[%s503_s1] sm:$0xf]  ;;  %285 = vmatprep.subr.mxu0 %v389_v1  ;;  %287 = vmatprep.mubr.msk.f32.mxu0 %vm390_vm0, %v389_v1  ;;  %v89_v3 = vld [vmem:[%s504_s2 + $0x8] sm:$0xff]  ;;  %vm427_vm2 = vmpackc.low %vm104_vm1, %vm104_vm1 }
   0x2   :  { %v88_v2 = vld [vmem:[%s504_s2] sm:$0xff]  ;;  %286 = vmatpush3.xpose.msra.mxu0 %v16_v0  ;;  %325 = vmatprep.subr.bf16.mxu1 %v391_v5  ;;  %v90_v8 = vld [vmem:[%s504_s2 + $0x10] sm:$0xff]  ;;  %v91_v9 = vld [vmem:[%s504_s2 + $0x18] sm:$0xff] }
   0x3   :  { %v15_v4 = vld [vmem:[%s502_s0] sm:$0xff]  ;;  %v326_v6 = vpack.c.bf16 %v89_v3, %v88_v2  ;;  %322 = vmatprep.mubr.msk.f32.mxu1 %vm390_vm0, %v389_v1 }
   0x5   :  { %328 = vmatpush3.bf16.xpose.msk.msra.mxu1 %vm427_vm2, %v326_v6  ;;  %288 = vmatmul.mubr.f32.vlgmr.msra.gmra.mrb[0].mxu0 %v15_v4 }
   0x6   :  { %329 = vmatprep.subr.bf16.mxu1 %v391_v5 }
   0x7   :  { %8 = vsyncpa [#allocation3], 0  ;;  %v330_v10 = vpack.c.bf16 %v91_v9, %v90_v8  ;;  %v92_v11 = vld [vmem:[%s504_s2 + $0x20] sm:$0xff]  ;;  %v93_v12 = vld [vmem:[%s504_s2 + $0x28] sm:$0xff]  ;;  %s392_s19 = smov [#allocation2]  }
   0x8   :  { %v334_v13 = vpack.c.bf16 %v93_v12, %v92_v11  ;;  %v94_v14 = vld [vmem:[%s504_s2 + $0x30] sm:$0xff]  ;;  %v95_v15 = vld [vmem:[%s504_s2 + $0x38] sm:$0xff]  ;;  %v96_v17 = vld [vmem:[%s504_s2 + $0x40] sm:$0xff]  ;;  %s240_s1 = sshll.u32 %s392_s19, 4  ;;  %s241_s1 = int_to_ptr.vmem [resolvable:$true] %s240_s1 }
   0x9   :  { %v338_v16 = vpack.c.bf16 %v95_v15, %v94_v14  ;;  %v97_v18 = vld [vmem:[%s504_s2 + $0x48] sm:$0xff]  ;;  %v98_v20 = vld [vmem:[%s504_s2 + $0x50] sm:$0xff]  ;;  %v99_v21 = vld [vmem:[%s504_s2 + $0x58] sm:$0xff]  ;;  %p370_p1 = scmp.lt.s32.totalorder %s241_s1, %s241_s1 }
   0xa   :  { %v342_v19 = vpack.c.bf16 %v97_v18, %v96_v17  ;;  %v346_v22 = vpack.c.bf16 %v99_v21, %v98_v20  ;;  %v100_v23 = vld [vmem:[%s504_s2 + $0x60] sm:$0xff]  ;;  %v101_v24 = vld [vmem:[%s504_s2 + $0x68] sm:$0xff]  ;;  %v102_v26 = vld [vmem:[%s504_s2 + $0x70] sm:$0xff] }
   0xb   :  { %v350_v25 = vpack.c.bf16 %v101_v24, %v100_v23  ;;  %v103_v27 = vld [vmem:[%s504_s2 + $0x78] sm:$0xff]  ;;  %s365_s2 = scalar_lea.vmem %s241_s1, 128 }
   0xc   :  { %v354_v28 = vpack.c.bf16 %v103_v27, %v102_v26  ;;  %p366_p0 = scmp.ne.s32.totalorder %s241_s1, %s365_s2  ;;  %p371_p2 = scmp.lt.s32.totalorder %s365_s2, %s365_s2 }
   0xd   :  { %332 = vmatpush3.bf16.xpose.msk.msra.mxu1 %vm427_vm2, %v330_v10 }
   0xe   :  { %333 = vmatprep.subr.bf16.mxu1 %v391_v5  ;;  %p372_p3 = por %p371_p2, %p370_p1 }
  0x10   :  { %p373_p4 = pnand %p372_p3, %p366_p0 }
  0x15   :  { %336 = vmatpush3.bf16.xpose.msk.msra.mxu1 %vm427_vm2, %v334_v13 }
  0x16   :  { %337 = vmatprep.subr.bf16.mxu1 %v391_v5 }
  0x1d   :  { %340 = vmatpush3.bf16.xpose.msk.msra.mxu1 %vm427_vm2, %v338_v16 }
  0x1e   :  { %341 = vmatprep.subr.bf16.mxu1 %v391_v5 }
  0x25   :  { %344 = vmatpush3.bf16.xpose.msk.msra.mxu1 %vm427_vm2, %v342_v19 }
  0x26   :  { %345 = vmatprep.subr.bf16.mxu1 %v391_v5 }
  0x2d   :  { %348 = vmatpush3.bf16.xpose.msk.msra.mxu1 %vm427_vm2, %v346_v22 }
  0x2e   :  { %349 = vmatprep.subr.bf16.mxu1 %v391_v5 }
  0x35   :  { %352 = vmatpush3.bf16.xpose.msk.msra.mxu1 %vm427_vm2, %v350_v25 }
  0x36   :  { %353 = vmatprep.subr.bf16.mxu1 %v391_v5 }
  0x3d   :  { %356 = vmatpush3.bf16.xpose.msk.msra.mxu1 %vm427_vm2, %v354_v28 }
  0xd8   :  { %v83_v29 = vpop.f32.mrb[0].mxu0 }
  0xd9   :  { %v87_v30 = vmax.f32 %v83_v29, 0.0  ;;  %v289_v31 = vpop.f32.mrb[1].mxu0 }
  0xdb   :  { %323 = vmatmul.mubr.msk.f32.vlgmr.msra.gmra.mrb[0].mxu1 %vm104_vm1, %v87_v30 }
 0x1ae   :  { %v222_v32 = vpop.f32.mrb[0].mxu1 }
 0x1af   :  { %v265_v33 = vmul.f32 -1.442695, %v222_v32  ;;  %v324_v34 = vpop.f32.mrb[1].mxu1 }
 0x1b1   :  { %361 = vpow2.f32 %v265_v33 }
 0x1bb   :  { %v362_v35 = vpop.eup %361 }
 0x1bc   :  { %v229_v36 = vadd.f32 1.0, %v362_v35 }
 0x1be   :  { %363 = vrcp.f32 %v229_v36 }
 0x1c8   :  { %v364_v37 = vpop.eup %363 }
 0x1c9   :  { %v232_v38 = vmul.f32 %v364_v37, %v15_v4 }
 0x1cb   :  { %233 = vst [vmem:[#allocation2] sm:$0xff] %v232_v38 }
 0x1cc   :  { %376 = shalt.err (!%p373_p4)
}
 0x1cd   :  { %s377_s21 = scalar_lea.hbm %s505_s3, 128 }
 0x1ce   :  { %p378_p5 = scmp.ne.s32.totalorder %s505_s3, %s377_s21  ;;  %p381_p6 = scmp.lt.u32.totalorder %s377_s21, %s505_s3 }
 0x1d0   :  { %p383_p7 = pnand %p381_p6, %p378_p5 }
 0x1d2   :  { %386 = shalt.err (!%p383_p7)
}
 0x1d3   :  { %243 = dma.vmem_to_hbm [thread:$0]  %s241_s1, 128, %s505_s3, [#allocation3]  }
 0x1d4   :  { %387 = dma.done.wait [#allocation3], 128  }
 0x1d5   :  { %388 = vsyncadd [#allocation3], 4294967168 }
 0x1d6   :  { %247 = vsyncpa [#allocation3], 1 }

</bundles_post_ra>
